<compile_context>
chip_gen: v5e
topology: v5e:2x2
jax: 0.10.0
libtpu: 0.0.40
codegen_flags: <defaults>
</compile_context>

<pallas_src>
import functools

import jax
import jax.numpy as jnp
import numpy as np
from jax import lax
from jax.experimental import pallas as pl
from jax.experimental.pallas import tpu as pltpu


def _round_up(x, k):
    return (x + k - 1) // k * k


def _cdiv(a, b):
    return -(-a // b)


def _choose_pack(d_groups, m, target_width=256):
    """How many m-wide groups to pack along the lane axis per kernel call.

    Prefers a lane-aligned (multiple of 128) width as close as possible to
    `target_width` (256 = one full v6e/v7x MXU output tile); never exceeds 512.
    Returns None if no pack divides (d, m) -> caller falls back to a
    transposed (d, N, m) layout.
    """
    full = d_groups * m
    if full <= target_width:
        return d_groups                       # one pack covering the full last dim
    best = None
    for p in range(1, d_groups + 1):
        if d_groups % p:
            continue
        width = p * m
        if width > 512:
            break
        if width % 128 == 0:
            if best is None or abs(width - target_width) < abs(best * m - target_width):
                best = p
    return best


def _pick_tile_n(n_total, wblk, itemsize, target_block_bytes, tile_n_max):
    """N-tile (multiple of 8) sized so one input block is ~target_block_bytes."""
    row_bytes = max(1, wblk * itemsize)
    cap = int(min(tile_n_max, target_block_bytes // row_bytes))
    cap = max(8, cap - cap % 8)
    return min(cap, _round_up(n_total, 8))


def _decorr_kernel(x_ref, s_slab_ref, corr_ref, whit_ref,
                   s_acc, rsq_acc, x4_acc, w_acc, *,
                   n_total, tile_n, nts, m, p, wblk, ragged,
                   compute_grad, need_corr, need_whit, use_bf16_gram):
    cs = pl.program_id(0)          # N-split (v7x two-core) index
    ni = pl.program_id(2)          # N-tile index within the split
    last_n = pl.num_programs(2) - 1

    @pl.when(ni == 0)
    def _init():
        if compute_grad:
            s_acc[...] = jnp.zeros_like(s_acc)
        if need_corr:
            rsq_acc[...] = jnp.zeros_like(rsq_acc)
            x4_acc[...] = jnp.zeros_like(x4_acc)
        if need_whit:
            w_acc[...] = jnp.zeros_like(w_acc)

    xb = x_ref[0]                                     # (tile_n, wblk), input dtype

    rowmask = None
    if ragged:
        # No HBM-side padding: zero the rows past N in-register.  n_valid can
        # be <= 0 for a fully out-of-range (clamped) tile -> everything masked.
        n_valid = n_total - (cs * nts + ni) * tile_n
        rowmask = lax.broadcasted_iota(jnp.int32, (tile_n, wblk), 0) < n_valid
        xb = jnp.where(rowmask, xb, jnp.zeros_like(xb))

    dn = (((0,), (0,)), ((), ()))                     # contract over the sample axis

    if compute_grad:
        xs = xb
        if use_bf16_gram and xs.dtype == jnp.float32:
            xs = xs.astype(jnp.bfloat16)
        # S += sum_n x_n x_n^T   (masked rows contribute nothing)
        s_acc[...] += lax.dot_general(xs, xs, dn,
                                      preferred_element_type=jnp.float32)

    if need_corr or need_whit:
        xf = xb.astype(jnp.float32)
        xsq = xf * xf

    if need_corr:
        # Off-diagonal sum of Q = (x^2)(x^2)^T per group, without forming Q:
        #   sum_{i!=j in g} Q_ij = sum_n (sum_{i in g} x_ni^2)^2 - sum_{i in g} sum_n x_ni^4
        x4_acc[...] += jnp.sum(xsq * xsq, axis=0, keepdims=True)
        if p == 1:
            r = jnp.sum(xsq, axis=1, keepdims=True)                 # (tile_n, 1)
        else:
            gi = lax.broadcasted_iota(jnp.int32, (wblk, p), 0) // m
            gj = lax.broadcasted_iota(jnp.int32, (wblk, p), 1)
            gmat = (gi == gj).astype(jnp.float32)                   # block-diag ones
            r = lax.dot_general(xsq, gmat, (((1,), (0,)), ((), ())),
                                preferred_element_type=jnp.float32)  # (tile_n, p)
        rsq_acc[...] += jnp.sum(r * r, axis=0, keepdims=True)

    if need_whit:
        v = xsq - 1.0
        v2 = v * v
        if ragged:
            v2 = jnp.where(rowmask, v2, 0.0)          # masked rows would give (0-1)^2=1
        w_acc[...] += jnp.sum(v2, axis=0, keepdims=True)

    @pl.when(ni == last_n)
    def _finalize():
        if compute_grad:
            if p == 1:
                slab = s_acc[...]                                    # (m, wblk)
            else:
                # Lane-dense block-diagonal extraction:
                #   slab[r, c] = S[(c//m)*m + r, c]
                # via one small selection matmul instead of p strided sub-tile
                # slices + masked stores.
                rr = lax.broadcasted_iota(jnp.int32, (wblk, wblk), 0)
                cc = lax.broadcasted_iota(jnp.int32, (wblk, wblk), 1)
                bd = ((rr // m) == (cc // m)).astype(jnp.float32)
                tr = lax.broadcasted_iota(jnp.int32, (m, wblk), 0)
                tc = lax.broadcasted_iota(jnp.int32, (m, wblk), 1)
                sel = ((tc % m) == tr).astype(jnp.float32)
                slab = lax.dot_general(sel, s_acc[...] * bd,
                                       (((1,), (0,)), ((), ())),
                                       preferred_element_type=jnp.float32)
            s_slab_ref[...] = slab.reshape(s_slab_ref.shape)
        else:
            s_slab_ref[...] = jnp.zeros_like(s_slab_ref)

        if need_corr:
            corr_ref[...] = (jnp.sum(rsq_acc[...])
                             - jnp.sum(x4_acc[...])).reshape(corr_ref.shape)
        else:
            corr_ref[...] = jnp.zeros_like(corr_ref)

        if need_whit:
            whit_ref[...] = jnp.sum(w_acc[...]).reshape(whit_ref.shape)
        else:
            whit_ref[...] = jnp.zeros_like(whit_ref)


def decorr_loss(x, kappa, compute_grad=True, compute_loss=True, batched=False, *,
                pack_width=256, target_block_bytes=4 << 20, tile_n_max=16384,
                use_bf16_gram=False):
    """Pallas implementation of DecorrLoss.forward. Returns (grad, corr, whit)."""
    assert kappa is not None, "Specify kappa for loss and gradient computation"
    assert 0.0 <= kappa <= 1.0, "kappa must be between 0 and 1"
    kappa = float(kappa)

    compute_grad = bool(compute_grad)
    need_corr = bool(compute_loss) and kappa < 1.0
    need_whit = bool(compute_loss) and kappa > 0.0
    if not (compute_grad or need_corr or need_whit):
        return None, None, None

    if x.dtype not in (jnp.float32, jnp.bfloat16):
        x = x.astype(jnp.float32)
    itemsize = jnp.dtype(x.dtype).itemsize

    if not batched:
        b, l, d = x.shape
        n_total = b * l
        g_total, m = 1, d
        p, wblk, num_outer = 1, d, 1
        arr = x.reshape(1, n_total, d)
        lane_packed = True
    else:
        b, l, d, m = x.shape
        n_total = b * l
        g_total = d
        p = _choose_pack(d, m, pack_width)
        if p is not None:
            wblk = p * m
            num_outer = d // p
            arr = x.reshape(1, n_total, d * m)        # free, contiguous reshape
            lane_packed = True
        else:
            # TODO(synk): no lane-aligned pack divides (d, m); this path still pays
            # a one-off XLA transpose into (d, N, m) instead of tiling the Gram.
            p, wblk, num_outer = 1, m, d
            arr = jnp.transpose(x, (2, 0, 1, 3)).reshape(d, n_total, m)
            lane_packed = False

    # TODO(synk): very large single-group dims (wblk > ~2048) would need a tiled
    # Gram accumulator; typical decorrelation sizes are far below that.
    tile_n = _pick_tile_n(n_total, wblk, itemsize, target_block_bytes, tile_n_max)
    nts_total = _cdiv(n_total, tile_n)

    # Split N across a leading parallel axis when the outer (pack) axis has
    # extent 1, so v7x's second TensorCore gets work (harmless on v5e/v6e).
    ncs = 2 if (num_outer == 1 and nts_total >= 4) else 1
    nts = _cdiv(nts_total, ncs)
    ragged = (ncs * nts * tile_n) != n_total
    last_blk = nts_total - 1

    if lane_packed:
        def in_idx(cs, oi, ni):
            nb = cs * nts + ni
            if ragged:
                nb = jnp.minimum(nb, last_blk)        # never start a block past N
            return (0, nb, oi)
    else:
        def in_idx(cs, oi, ni):
            nb = cs * nts + ni
            if ragged:
                nb = jnp.minimum(nb, last_blk)
            return (oi, nb, 0)

    out_shape = (
        jax.ShapeDtypeStruct((ncs, num_outer, m, wblk), jnp.float32),  # S block-diag slab
        jax.ShapeDtypeStruct((ncs, num_outer, 1, 1), jnp.float32),     # corr numerator
        jax.ShapeDtypeStruct((ncs, num_outer, 1, 1), jnp.float32),     # whit numerator
    )
    out_specs = [
        pl.BlockSpec((1, 1, m, wblk), lambda cs, oi, ni: (cs, oi, 0, 0)),
        pl.BlockSpec((1, 1, 1, 1), lambda cs, oi, ni: (cs, oi, 0, 0)),
        pl.BlockSpec((1, 1, 1, 1), lambda cs, oi, ni: (cs, oi, 0, 0)),
    ]

    s_shape = (wblk, wblk) if compute_grad else (8, 128)
    rsq_shape = (1, p) if need_corr else (1, 128)
    x4_shape = (1, wblk) if need_corr else (1, 128)
    w_shape = (1, wblk) if need_whit else (1, 128)
    scratch_shapes = [
        pltpu.VMEM(s_shape, jnp.float32),    # S accumulator
        pltpu.VMEM(rsq_shape, jnp.float32),  # sum_n (per-group row-sum of x^2)^2
        pltpu.VMEM(x4_shape, jnp.float32),   # sum_n x^4
        pltpu.VMEM(w_shape, jnp.float32),    # sum_n (x^2 - 1)^2
    ]

    in_block_bytes = tile_n * wblk * itemsize
    use_extra_buf = (lane_packed and wblk < arr.shape[-1]
                     and in_block_bytes <= (5 << 20) and hasattr(pl, "Buffered"))
    n_in_buf = 3 if use_extra_buf else 2
    scratch_bytes = 4 * sum(a * b for (a, b) in
                            (s_shape, rsq_shape, x4_shape, w_shape))
    out_bytes = 2 * 4 * (m * wblk + 2)
    need_bytes = n_in_buf * in_block_bytes + scratch_bytes + out_bytes
    # Always set the scoped VMEM limit explicitly (v5e default is only 16 MiB);
    # cap at 48 MiB so a tile choice still ports to v7x's 64 MiB per-core VMEM.
    vmem_limit = int(min(48 << 20, max(need_bytes + (8 << 20), 16 << 20)))
    cparams = pltpu.CompilerParams(
        dimension_semantics=("parallel", "parallel", "arbitrary"),
        vmem_limit_bytes=vmem_limit)

    kernel = functools.partial(
        _decorr_kernel, n_total=n_total, tile_n=tile_n, nts=nts, m=m, p=p,
        wblk=wblk, ragged=ragged, compute_grad=compute_grad,
        need_corr=need_corr, need_whit=need_whit, use_bf16_gram=use_bf16_gram)

    def _run(extra_buffering):
        if extra_buffering:
            in_spec = pl.BlockSpec((1, tile_n, wblk), in_idx,
                                   pipeline_mode=pl.Buffered(3))
        else:
            in_spec = pl.BlockSpec((1, tile_n, wblk), in_idx)
        return pl.pallas_call(
            kernel,
            out_shape=out_shape,
            grid_spec=pltpu.PrefetchScalarGridSpec(
                num_scalar_prefetch=0,
                grid=(ncs, num_outer, nts),
                in_specs=[in_spec],
                out_specs=out_specs,
                scratch_shapes=scratch_shapes),
            compiler_params=cparams,
        )(arr)

    if use_extra_buf:
        try:
            outs = _run(True)
        except Exception:      # older jax without Buffered pipelining -> default depth
            outs = _run(False)
    else:
        outs = _run(False)
    s_slab, corr_num, whit_num = outs

    grad_out = corr_out = whit_out = None
    inv_n = 1.0 / float(n_total)

    if compute_grad:
        s_sum = jnp.sum(s_slab, axis=0)                       # (num_outer, m, wblk)
        mean_slab = s_sum * inv_n
        eye = (jnp.arange(wblk)[None, :] % m
               == jnp.arange(m)[:, None]).astype(jnp.float32)  # tiled identity (m, wblk)
        # Single formula covering kappa==0 / ==1 / general:
        #   off-diag: (1-kappa) * mean(C)     diag: kappa * (mean(x^2) - 1)
        grad_slab = (1.0 - kappa) * mean_slab * (1.0 - eye) \
            + kappa * eye * (mean_slab - 1.0)
        grad_full = grad_slab.reshape(num_outer, m, p, m).transpose(0, 2, 1, 3)
        grad_full = grad_full.reshape(num_outer * p, m, m)
        grad_out = grad_full[0] if not batched else grad_full

    if need_corr:
        corr_out = jnp.sum(corr_num) / (float(g_total) * float(n_total)
                                        * float(m) * float(m))
    if need_whit:
        whit_out = jnp.sum(whit_num) / (float(g_total) * float(n_total) * float(m))
    return grad_out, corr_out, whit_out


def _reference(x, kappa, batched):
    """Pure-JAX reference mirroring the PyTorch semantics."""
    x = x.astype(jnp.float32)
    if not batched:
        d = x.shape[-1]
        xr = x.reshape(1, -1, d)
    else:
        b, l, d, m = x.shape
        xr = jnp.transpose(x, (2, 0, 1, 3)).reshape(d, -1, m)
    md = xr.shape[-1]
    eye = jnp.eye(md, dtype=jnp.float32)
    C = xr[..., :, None] * xr[..., None, :]
    diag = jnp.diagonal(C, axis1=-2, axis2=-1)
    V = diag - 1.0
    C_off = C * (1.0 - eye)
    mean_C = jnp.mean(C_off, axis=1)
    mean_V = jnp.mean(V, axis=1)
    grad = (1.0 - kappa) * mean_C + kappa * mean_V[..., None] * eye
    corr = jnp.mean(C_off * C_off) if kappa < 1 else None
    whit = jnp.mean(V * V) if kappa > 0 else None
    if not batched:
        grad = grad[0]
    return grad, corr, whit


def _check(got, ref, rtol=1e-2, atol=1e-3):
    np.testing.assert_allclose(np.asarray(got), np.asarray(ref),
                               rtol=rtol, atol=atol)


if __name__ == "__main__":
    key = jax.random.PRNGKey(0)
    ks = jax.random.split(key, 8)

    # 1) unbatched, general kappa
    x1 = jax.random.normal(ks[0], (2, 64, 32), dtype=jnp.float32)
    g, c, w = decorr_loss(x1, 0.5, True, True, batched=False)
    jax.block_until_ready((g, c, w))
    gr, cr, wr = _reference(x1, 0.5, batched=False)
    _check(g, gr); _check(c, cr); _check(w, wr)

    # 2) batched, all groups fit one lane pack (wblk = d*m = 64)
    x2 = jax.random.normal(ks[1], (2, 8, 4, 16), dtype=jnp.float32)
    g, c, w = decorr_loss(x2, 0.5, True, True, batched=True)
    jax.block_until_ready((g, c, w))
    gr, cr, wr = _reference(x2, 0.5, batched=True)
    _check(g, gr); _check(c, cr); _check(w, wr)

    # 3) batched, d*m = 1024 -> 4 packs of width 256 (MXU-tile-sized packs)
    x3 = jax.random.normal(ks[2], (2, 8, 32, 32), dtype=jnp.float32)
    g, c, w = decorr_loss(x3, 0.5, True, True, batched=True)
    jax.block_until_ready((g, c, w))
    gr, cr, wr = _reference(x3, 0.5, batched=True)
    _check(g, gr); _check(c, cr); _check(w, wr)

    # 4) unbatched, kappa = 1 (corr path statically skipped), ragged N with
    #    in-kernel masking, multi-tile, and the 2-way N core-split
    x4 = jax.random.normal(ks[3], (2, 50, 16), dtype=jnp.float32)
    g, c, w = decorr_loss(x4, 1.0, True, True, batched=False, tile_n_max=16)
    jax.block_until_ready((g, w))
    gr, cr, wr = _reference(x4, 1.0, batched=False)
    assert c is None and cr is None
    _check(g, gr); _check(w, wr)

    # 5) unbatched, kappa = 0 (whitening path statically skipped)
    x5 = jax.random.normal(ks[4], (2, 16, 8), dtype=jnp.float32)
    g, c, w = decorr_loss(x5, 0.0, True, True, batched=False)
    jax.block_until_ready((g, c))
    gr, cr, wr = _reference(x5, 0.0, batched=False)
    assert w is None and wr is None
    _check(g, gr); _check(c, cr)

    # 6) bf16 input (matmul in bf16, statistics accumulated in f32)
    x6 = jax.random.normal(ks[5], (2, 8, 4, 16), dtype=jnp.bfloat16)
    g, c, w = decorr_loss(x6, 0.5, True, True, batched=True)
    jax.block_until_ready((g, c, w))
    gr, cr, wr = _reference(x6, 0.5, batched=True)
    _check(g, gr, rtol=2e-2, atol=2e-3)
    _check(c, cr, rtol=2e-2, atol=2e-3)
    _check(w, wr, rtol=2e-2, atol=2e-3)

    # 7) batched, no lane-aligned pack divides (d=6, m=48) -> transposed fallback
    x7 = jax.random.normal(ks[6], (2, 8, 6, 48), dtype=jnp.float32)
    g, c, w = decorr_loss(x7, 0.3, True, True, batched=True)
    jax.block_until_ready((g, c, w))
    gr, cr, wr = _reference(x7, 0.3, batched=True)
    _check(g, gr); _check(c, cr); _check(w, wr)

    print("KERNEL_OK")
</pallas_src>

<mosaic_0001>
module attributes {stable_mosaic.version = 11 : i64} {
  func.func @_decorr_kernel(%arg0: i32, %arg1: i32, %arg2: i32, %arg3: memref<1x128x32xf32, #tpu.memory_space<vmem>>, %arg4: memref<1x1x32x32xf32, #tpu.memory_space<vmem>>, %arg5: memref<1x1x1x1xf32, #tpu.memory_space<vmem>>, %arg6: memref<1x1x1x1xf32, #tpu.memory_space<vmem>>, %arg7: memref<32x32xf32, #tpu.memory_space<vmem>>, %arg8: memref<1x1xf32, #tpu.memory_space<vmem>>, %arg9: memref<1x32xf32, #tpu.memory_space<vmem>>, %arg10: memref<1x32xf32, #tpu.memory_space<vmem>>) attributes {dimension_semantics = [#tpu.dimension_semantics<parallel>, #tpu.dimension_semantics<parallel>, #tpu.dimension_semantics<arbitrary>], iteration_bounds = array<i64: 1, 1, 1>, scalar_prefetch = 0 : i64, scratch_operands = 4 : i64, tpu.core_type = #tpu.core_type<tc>, window_params = [{transform_indices = @transform_0, window_bounds = array<i64: 1, 128, 32>}, {transform_indices = @transform_1, window_bounds = array<i64: 1, 1, 32, 32>}, {transform_indices = @transform_2, window_bounds = array<i64: 1, 1, 1, 1>}, {transform_indices = @transform_3, window_bounds = array<i64: 1, 1, 1, 1>}]} {
    %c0_i32 = arith.constant 0 : i32
    %0 = arith.cmpi eq, %arg2, %c0_i32 : i32
    %1 = arith.extui %0 : i1 to i32
    %c0_i32_0 = arith.constant 0 : i32
    %2 = arith.cmpi ne, %1, %c0_i32_0 : i32
    scf.if %2 {
      %cst_26 = arith.constant 0.000000e+00 : f32
      %35 = vector.broadcast %cst_26 : f32 to vector<32x32xf32>
      %c0_27 = arith.constant 0 : index
      %c0_28 = arith.constant 0 : index
      %36 = vector.load %arg7[%c0_27, %c0_28] : memref<32x32xf32, #tpu.memory_space<vmem>>, vector<32x32xf32>
      tpu.vector_store %arg7[%c0_27, %c0_28], %35 {strides = array<i32>} : memref<32x32xf32, #tpu.memory_space<vmem>>, vector<32x32xf32>,
      %cst_29 = arith.constant 0.000000e+00 : f32
      %37 = vector.broadcast %cst_29 : f32 to vector<1x1xf32>
      %c0_30 = arith.constant 0 : index
      %c0_31 = arith.constant 0 : index
      %38 = vector.load %arg8[%c0_30, %c0_31] : memref<1x1xf32, #tpu.memory_space<vmem>>, vector<1x1xf32>
      tpu.vector_store %arg8[%c0_30, %c0_31], %37 {strides = array<i32>} : memref<1x1xf32, #tpu.memory_space<vmem>>, vector<1x1xf32>,
      %cst_32 = arith.constant 0.000000e+00 : f32
      %39 = vector.broadcast %cst_32 : f32 to vector<1x32xf32>
      %c0_33 = arith.constant 0 : index
      %c0_34 = arith.constant 0 : index
      %40 = vector.load %arg9[%c0_33, %c0_34] : memref<1x32xf32, #tpu.memory_space<vmem>>, vector<1x32xf32>
      tpu.vector_store %arg9[%c0_33, %c0_34], %39 {strides = array<i32>} : memref<1x32xf32, #tpu.memory_space<vmem>>, vector<1x32xf32>,
      %cst_35 = arith.constant 0.000000e+00 : f32
      %41 = vector.broadcast %cst_35 : f32 to vector<1x32xf32>
      %c0_36 = arith.constant 0 : index
      %c0_37 = arith.constant 0 : index
      %42 = vector.load %arg10[%c0_36, %c0_37] : memref<1x32xf32, #tpu.memory_space<vmem>>, vector<1x32xf32>
      tpu.vector_store %arg10[%c0_36, %c0_37], %41 {strides = array<i32>} : memref<1x32xf32, #tpu.memory_space<vmem>>, vector<1x32xf32>,
    } else {
    }
    %c0 = arith.constant 0 : index
    %c0_1 = arith.constant 0 : index
    %c0_2 = arith.constant 0 : index
    %3 = vector.load %arg3[%c0, %c0_1, %c0_2] : memref<1x128x32xf32, #tpu.memory_space<vmem>>, vector<1x128x32xf32>
    %4 = vector.shape_cast %3 : vector<1x128x32xf32> to vector<128x32xf32>
    %c0_3 = arith.constant 0 : index
    %c0_4 = arith.constant 0 : index
    %5 = vector.load %arg7[%c0_3, %c0_4] : memref<32x32xf32, #tpu.memory_space<vmem>>, vector<32x32xf32>
    %cst = arith.constant dense<0.000000e+00> : vector<32x32xf32>
    %6 = tpu.matmul %4, %4, %cst {dimension_numbers = #tpu.dot_dimension_numbers<[0], [0], [1], [1], [0, 1, 1, 1], [], []>} : vector<128x32xf32>, vector<128x32xf32>, vector<32x32xf32> -> vector<32x32xf32>
    %7 = arith.addf %5, %6 : vector<32x32xf32>
    %c0_5 = arith.constant 0 : index
    %c0_6 = arith.constant 0 : index
    %8 = vector.load %arg7[%c0_5, %c0_6] : memref<32x32xf32, #tpu.memory_space<vmem>>, vector<32x32xf32>
    tpu.vector_store %arg7[%c0_5, %c0_6], %7 {strides = array<i32>} : memref<32x32xf32, #tpu.memory_space<vmem>>, vector<32x32xf32>,
    %9 = arith.mulf %4, %4 : vector<128x32xf32>
    %c0_7 = arith.constant 0 : index
    %c0_8 = arith.constant 0 : index
    %10 = vector.load %arg9[%c0_7, %c0_8] : memref<1x32xf32, #tpu.memory_space<vmem>>, vector<1x32xf32>
    %11 = arith.mulf %9, %9 : vector<128x32xf32>
    %cst_9 = arith.constant dense<0.000000e+00> : vector<32xf32>
    %12 = vector.multi_reduction <add>, %11, %cst_9 [0] : vector<128x32xf32> to vector<32xf32>
    %13 = vector.shape_cast %12 : vector<32xf32> to vector<1x32xf32>
    %14 = arith.addf %10, %13 : vector<1x32xf32>
    %c0_10 = arith.constant 0 : index
    %c0_11 = arith.constant 0 : index
    %15 = vector.load %arg9[%c0_10, %c0_11] : memref<1x32xf32, #tpu.memory_space<vmem>>, vector<1x32xf32>
    tpu.vector_store %arg9[%c0_10, %c0_11], %14 {strides = array<i32>} : memref<1x32xf32, #tpu.memory_space<vmem>>, vector<1x32xf32>,
    %cst_12 = arith.constant dense<0.000000e+00> : vector<128xf32>
    %16 = vector.multi_reduction <add>, %9, %cst_12 [1] : vector<128x32xf32> to vector<128xf32>
    %17 = vector.shape_cast %16 : vector<128xf32> to vector<128x1xf32>
    %c0_13 = arith.constant 0 : index
    %c0_14 = arith.constant 0 : index
    %18 = vector.load %arg8[%c0_13, %c0_14] : memref<1x1xf32, #tpu.memory_space<vmem>>, vector<1x1xf32>
    %19 = arith.mulf %17, %17 : vector<128x1xf32>
    %cst_15 = arith.constant dense<0.000000e+00> : vector<1xf32>
    %20 = vector.multi_reduction <add>, %19, %cst_15 [0] : vector<128x1xf32> to vector<1xf32>
    %21 = vector.shape_cast %20 : vector<1xf32> to vector<1x1xf32>
    %22 = arith.addf %18, %21 : vector<1x1xf32>
    %c0_16 = arith.constant 0 : index
    %c0_17 = arith.constant 0 : index
    %23 = vector.load %arg8[%c0_16, %c0_17] : memref<1x1xf32, #tpu.memory_space<vmem>>, vector<1x1xf32>
    tpu.vector_store %arg8[%c0_16, %c0_17], %22 {strides = array<i32>} : memref<1x1xf32, #tpu.memory_space<vmem>>, vector<1x1xf32>,
    %cst_18 = arith.constant 1.000000e+00 : f32
    %24 = vector.broadcast %cst_18 : f32 to vector<128x32xf32>
    %25 = arith.subf %9, %24 : vector<128x32xf32>
    %26 = arith.mulf %25, %25 : vector<128x32xf32>
    %c0_19 = arith.constant 0 : index
    %c0_20 = arith.constant 0 : index
    %27 = vector.load %arg10[%c0_19, %c0_20] : memref<1x32xf32, #tpu.memory_space<vmem>>, vector<1x32xf32>
    %cst_21 = arith.constant dense<0.000000e+00> : vector<32xf32>
    %28 = vector.multi_reduction <add>, %26, %cst_21 [0] : vector<128x32xf32> to vector<32xf32>
    %29 = vector.shape_cast %28 : vector<32xf32> to vector<1x32xf32>
    %30 = arith.addf %27, %29 : vector<1x32xf32>
    %c0_22 = arith.constant 0 : index
    %c0_23 = arith.constant 0 : index
    %31 = vector.load %arg10[%c0_22, %c0_23] : memref<1x32xf32, #tpu.memory_space<vmem>>, vector<1x32xf32>
    tpu.vector_store %arg10[%c0_22, %c0_23], %30 {strides = array<i32>} : memref<1x32xf32, #tpu.memory_space<vmem>>, vector<1x32xf32>,
    %c0_i32_24 = arith.constant 0 : i32
    %32 = arith.cmpi eq, %arg2, %c0_i32_24 : i32
    %33 = arith.extui %32 : i1 to i32
    %c0_i32_25 = arith.constant 0 : i32
    %34 = arith.cmpi ne, %33, %c0_i32_25 : i32
    scf.if %34 {
      %c0_26 = arith.constant 0 : index
      %c0_27 = arith.constant 0 : index
      %35 = vector.load %arg7[%c0_26, %c0_27] : memref<32x32xf32, #tpu.memory_space<vmem>>, vector<32x32xf32>
      %36 = vector.shape_cast %35 : vector<32x32xf32> to vector<1x1x32x32xf32>
      %c0_28 = arith.constant 0 : index
      %c0_29 = arith.constant 0 : index
      %c0_30 = arith.constant 0 : index
      %c0_31 = arith.constant 0 : index
      %37 = vector.load %arg4[%c0_28, %c0_29, %c0_30, %c0_31] : memref<1x1x32x32xf32, #tpu.memory_space<vmem>>, vector<1x1x32x32xf32>
      tpu.vector_store %arg4[%c0_28, %c0_29, %c0_30, %c0_31], %36 {strides = array<i32>} : memref<1x1x32x32xf32, #tpu.memory_space<vmem>>, vector<1x1x32x32xf32>,
      %c0_32 = arith.constant 0 : index
      %c0_33 = arith.constant 0 : index
      %38 = vector.load %arg8[%c0_32, %c0_33] : memref<1x1xf32, #tpu.memory_space<vmem>>, vector<1x1xf32>
      %39 = vector.shape_cast %38 : vector<1x1xf32> to vector<1x1x1xf32>
      %cst_34 = arith.constant dense<0.000000e+00> : vector<1xf32>
      %40 = vector.multi_reduction <add>, %39, %cst_34 [1, 2] : vector<1x1x1xf32> to vector<1xf32>
      %41 = vector.shape_cast %40 : vector<1xf32> to vector<1x1x1xf32>
      %42 = vector.extract %41[0, 0, 0] : f32 from vector<1x1x1xf32>
      %c0_35 = arith.constant 0 : index
      %c0_36 = arith.constant 0 : index
      %43 = vector.load %arg9[%c0_35, %c0_36] : memref<1x32xf32, #tpu.memory_space<vmem>>, vector<1x32xf32>
      %44 = vector.shape_cast %43 : vector<1x32xf32> to vector<1x1x32xf32>
      %cst_37 = arith.constant dense<0.000000e+00> : vector<1xf32>
      %45 = vector.multi_reduction <add>, %44, %cst_37 [1, 2] : vector<1x1x32xf32> to vector<1xf32>
      %46 = vector.shape_cast %45 : vector<1xf32> to vector<1x1x1xf32>
      %47 = vector.extract %46[0, 0, 0] : f32 from vector<1x1x1xf32>
      %48 = arith.subf %42, %47 : f32
      %49 = vector.broadcast %48 : f32 to vector<1x1x1x1xf32>
      %c0_38 = arith.constant 0 : index
      %c0_39 = arith.constant 0 : index
      %c0_40 = arith.constant 0 : index
      %c0_41 = arith.constant 0 : index
      %50 = vector.load %arg5[%c0_38, %c0_39, %c0_40, %c0_41] : memref<1x1x1x1xf32, #tpu.memory_space<vmem>>, vector<1x1x1x1xf32>
      tpu.vector_store %arg5[%c0_38, %c0_39, %c0_40, %c0_41], %49 {strides = array<i32>} : memref<1x1x1x1xf32, #tpu.memory_space<vmem>>, vector<1x1x1x1xf32>,
      %c0_42 = arith.constant 0 : index
      %c0_43 = arith.constant 0 : index
      %51 = vector.load %arg10[%c0_42, %c0_43] : memref<1x32xf32, #tpu.memory_space<vmem>>, vector<1x32xf32>
      %52 = vector.shape_cast %51 : vector<1x32xf32> to vector<1x1x32xf32>
      %cst_44 = arith.constant dense<0.000000e+00> : vector<1xf32>
      %53 = vector.multi_reduction <add>, %52, %cst_44 [1, 2] : vector<1x1x32xf32> to vector<1xf32>
      %54 = vector.shape_cast %53 : vector<1xf32> to vector<1x1x1xf32>
      %55 = vector.extract %54[0, 0, 0] : f32 from vector<1x1x1xf32>
      %56 = vector.broadcast %55 : f32 to vector<1x1x1x1xf32>
      %c0_45 = arith.constant 0 : index
      %c0_46 = arith.constant 0 : index
      %c0_47 = arith.constant 0 : index
      %c0_48 = arith.constant 0 : index
      %57 = vector.load %arg6[%c0_45, %c0_46, %c0_47, %c0_48] : memref<1x1x1x1xf32, #tpu.memory_space<vmem>>, vector<1x1x1x1xf32>
      tpu.vector_store %arg6[%c0_45, %c0_46, %c0_47, %c0_48], %56 {strides = array<i32>} : memref<1x1x1x1xf32, #tpu.memory_space<vmem>>, vector<1x1x1x1xf32>,
    } else {
    }
    return
  }
  func.func @transform_0(%arg0: i32, %arg1: i32, %arg2: i32) -> (i32, i32, i32) {
    %c1_i32 = arith.constant 1 : i32
    %0 = arith.muli %arg0, %c1_i32 : i32
    %1 = arith.addi %0, %arg2 : i32
    %c0_i32 = arith.constant 0 : i32
    %c0_i32_0 = arith.constant 0 : i32
    return %c0_i32, %1, %arg1 : i32, i32, i32
  }
  func.func @transform_1(%arg0: i32, %arg1: i32, %arg2: i32) -> (i32, i32, i32, i32) {
    %c0_i32 = arith.constant 0 : i32
    %c0_i32_0 = arith.constant 0 : i32
    %c0_i32_1 = arith.constant 0 : i32
    return %arg0, %arg1, %c0_i32, %c0_i32_0 : i32, i32, i32, i32
  }
  func.func @transform_2(%arg0: i32, %arg1: i32, %arg2: i32) -> (i32, i32, i32, i32) {
    %c0_i32 = arith.constant 0 : i32
    %c0_i32_0 = arith.constant 0 : i32
    %c0_i32_1 = arith.constant 0 : i32
    return %arg0, %arg1, %c0_i32, %c0_i32_0 : i32, i32, i32, i32
  }
  func.func @transform_3(%arg0: i32, %arg1: i32, %arg2: i32) -> (i32, i32, i32, i32) {
    %c0_i32 = arith.constant 0 : i32
    %c0_i32_0 = arith.constant 0 : i32
    %c0_i32_1 = arith.constant 0 : i32
    return %arg0, %arg1, %c0_i32, %c0_i32_0 : i32, i32, i32, i32
  }
}

</mosaic_0001>

<bundles_post_ra>
// kernel: tpu_custom_call.1
= control target key start
LH: loop header
LB: loop body
LE: loop exit
PB: predicated region body
PF: predicated region fallthrough
CT: control target
= control target key end

     0   :  { %9 = vsyncpa [#allocation7], 0  ;;  %s925_s0 = inlined_call_operand.vmem [shape: f32[1,128,32], index: 0, kind: input, shape index: {}]   ;;  %s926_s1 = inlined_call_operand.hbm [shape: f32[1,1,32,32], index: 1, kind: output, shape index: {0}]   ;;  %s927_s2 = inlined_call_operand.hbm [shape: f32[1,1,1,1], index: 2, kind: output, shape index: {1}]   ;;  %s928_s3 = inlined_call_operand.hbm [shape: f32[1,1,1,1], index: 3, kind: output, shape index: {2}]  }
   0x1   :  { %v650_v0 = vld [vmem:[%s925_s0] sm:$0xff] }
   0x2   :  { %69 = vxpose.xlu0.b32.start [1/16] (narrow) %v650_v0, 32 }
   0x3   :  { %10 = vsyncpa [#allocation9], 0  ;;  %v656_v1 = vld [vmem:[%s925_s0 + $0x8] sm:$0xff]  ;;  %v139_v2 = vmul.f32 %v650_v0, %v650_v0  ;;  %v663_v3 = vld [vmem:[%s925_s0 + $0x10] sm:$0xff]  ;;  %vm39_vm0 = vcmask 261120   ;;  %vm46_vm1 = vcmask 253952  }
   0x4   :  { %v141_v5 = vmul.f32 %v663_v3, %v663_v3  ;;  %v140_v12 = vmul.f32 %v656_v1, %v656_v1  ;;  %v675_v13 = vld [vmem:[%s925_s0 + $0x18] sm:$0xff]  ;;  %v692_v31 = vld [vmem:[%s925_s0 + $0x20] sm:$0xff]  ;;  %v699_v36 = vld [vmem:[%s925_s0 + $0x28] sm:$0xff]  ;;  %vm44_vm2 = vcmask 0   ;;  %s622_s17 = smov [#allocation8]   ;;  %s434_s21 = sshll.u32 %s927_s2, 4  ;;  %s435_s21 = int_to_ptr.hbm [resolvable:$true] %s434_s21 }
   0x5   :  { %v212_v4 = vsel %vm39_vm0, %v139_v2, 0.0  ;;  %v469_v6 = vadd.f32 -1.0, %v139_v2  ;;  %v156_v8 = vmul.f32 %v139_v2, %v139_v2  ;;  %v142_v19 = vmul.f32 %v675_v13, %v675_v13  ;;  %v713_v53 = vld [vmem:[%s925_s0 + $0x30] sm:$0xff]  ;;  %v722_v59 = vld [vmem:[%s925_s0 + $0x38] sm:$0xff]  ;;  %s432_s18 = sshll.u32 %s622_s17, 4  ;;  %s623_s24 = smov [#allocation10]   ;;  %s433_s18 = int_to_ptr.vmem [resolvable:$true] %s432_s18 }
   0x6   :  { %213 = vadd.xlane.f32.xlu1 %v212_v4  ;;  %v218_v7 = vsel %vm39_vm0, %v141_v5, 0.0  ;;  %v471_v9 = vadd.f32 -1.0, %v141_v5  ;;  %v158_v11 = vmul.f32 %v141_v5, %v141_v5  ;;  %v157_v16 = vmul.f32 %v140_v12, %v140_v12  ;;  %s443_s25 = sshll.u32 %s623_s24, 4  ;;  %s445_s28 = sshll.u32 %s928_s3, 4  ;;  %s444_s25 = int_to_ptr.vmem [resolvable:$true] %s443_s25  ;;  %s446_s28 = int_to_ptr.hbm [resolvable:$true] %s445_s28 }
   0x7   :  { %219 = vadd.xlane.f32.xlu2 %v218_v7  ;;  %v317_v10 = vmul.f32 %v469_v6, %v469_v6  ;;  %v172_v14 = vsel %vm39_vm0, %v156_v8, 0.0  ;;  %v215_v17 = vsel %vm39_vm0, %v140_v12, 0.0  ;;  %v470_v18 = vadd.f32 -1.0, %v140_v12  ;;  %v738_v12 = vld [vmem:[%s925_s0 + $0x48] sm:$0xff]  ;;  %s624_s2 = smov [#allocation6]   ;;  %s420_s5 = sshll.u32 %s926_s1, 4  ;;  %s421_s5 = int_to_ptr.hbm [resolvable:$true] %s420_s5 }
   0x8   :  { %v319_v15 = vmul.f32 %v471_v9, %v471_v9  ;;  %v175_v21 = vsel %vm39_vm0, %v158_v11, 0.0  ;;  %v173_v23 = vsel %vm39_vm0, %v157_v16, 0.0  ;;  %v159_v24 = vmul.f32 %v142_v19, %v142_v19  ;;  %s418_s3 = sshll.u32 %s624_s2, 4  ;;  %s625_s6 = smov 128   ;;  %s419_s3 = int_to_ptr.vmem [resolvable:$true] %s418_s3 }
   0x9   :  { %v334_v20 = vsel %vm39_vm0, %v317_v10, 0.0  ;;  %v318_v22 = vmul.f32 %v470_v18, %v470_v18  ;;  %v221_v25 = vsel %vm39_vm0, %v142_v19, 0.0  ;;  %v174_v26 = vadd.f32 %v173_v23, %v172_v14  ;;  %v732_v10 = vld [vmem:[%s925_s0 + $0x40] sm:$0xff]  ;;  %s626_s7 = smov 8  }
   0xa   :  { %70 = vxpose.xlu0.b32.cont [2/16] (narrow) %v656_v1, 32  ;;  %v472_v27 = vadd.f32 -1.0, %v142_v19  ;;  %v337_v28 = vsel %vm39_vm0, %v319_v15, 0.0  ;;  %v177_v30 = vsel %vm39_vm0, %v159_v24, 0.0  ;;  %v143_v35 = vmul.f32 %v692_v31, %v692_v31 }
   0xb   :  { %v335_v29 = vsel %vm39_vm0, %v318_v22, 0.0  ;;  %v176_v33 = vadd.f32 %v175_v21, %v174_v26  ;;  %v144_v43 = vmul.f32 %v699_v36, %v699_v36  ;;  %v145_v56 = vmul.f32 %v713_v53, %v713_v53 }
   0xc   :  { %v336_v32 = vadd.f32 %v335_v29, %v334_v20  ;;  %v320_v34 = vmul.f32 %v472_v27, %v472_v27  ;;  %v160_v40 = vmul.f32 %v143_v35, %v143_v35  ;;  %v224_v41 = vsel %vm39_vm0, %v143_v35, 0.0 }
   0xd   :  { %v178_v39 = vadd.f32 %v177_v30, %v176_v33  ;;  %v473_v42 = vadd.f32 -1.0, %v143_v35  ;;  %v161_v47 = vmul.f32 %v144_v43, %v144_v43  ;;  %v227_v48 = vsel %vm39_vm0, %v144_v43, 0.0 }
   0xe   :  { %216 = vadd.xlane.f32.xlu1 %v215_v17  ;;  %v338_v37 = vadd.f32 %v337_v28, %v336_v32  ;;  %v339_v38 = vsel %vm39_vm0, %v320_v34, 0.0  ;;  %v179_v46 = vsel %vm39_vm0, %v160_v40, 0.0  ;;  %v474_v50 = vadd.f32 -1.0, %v144_v43  ;;  %v760_v34 = vld [vmem:[%s925_s0 + $0x58] sm:$0xff] }
   0xf   :  { %222 = vadd.xlane.f32.xlu2 %v221_v25  ;;  %v321_v45 = vmul.f32 %v473_v42, %v473_v42  ;;  %v180_v49 = vadd.f32 %v179_v46, %v178_v39  ;;  %v181_v52 = vsel %vm39_vm0, %v161_v47, 0.0  ;;  %v162_v60 = vmul.f32 %v145_v56, %v145_v56  ;;  %v751_v25 = vld [vmem:[%s925_s0 + $0x50] sm:$0xff]  ;;  %v769_v42 = vld [vmem:[%s925_s0 + $0x60] sm:$0xff] }
  0x10   :  { %v340_v44 = vadd.f32 %v339_v38, %v338_v37  ;;  %v322_v55 = vmul.f32 %v474_v50, %v474_v50  ;;  %v230_v61 = vsel %vm39_vm0, %v145_v56, 0.0  ;;  %v475_v62 = vadd.f32 -1.0, %v145_v56 }
  0x11   :  { %v341_v51 = vsel %vm39_vm0, %v321_v45, 0.0  ;;  %v182_v58 = vadd.f32 %v181_v52, %v180_v49  ;;  %v146_v2 = vmul.f32 %v722_v59, %v722_v59  ;;  %v183_v5 = vsel %vm39_vm0, %v162_v60, 0.0 }
  0x12   :  { %71 = vxpose.xlu0.b32.cont [3/16] (narrow) %v663_v3, 32  ;;  %v342_v54 = vadd.f32 %v341_v51, %v340_v44  ;;  %v343_v57 = vsel %vm39_vm0, %v322_v55, 0.0  ;;  %v323_v4 = vmul.f32 %v475_v62, %v475_v62  ;;  %v147_v17 = vmul.f32 %v732_v10, %v732_v10 }
  0x13   :  { %v184_v6 = vadd.f32 %v183_v5, %v182_v58  ;;  %v163_v7 = vmul.f32 %v146_v2, %v146_v2  ;;  %v233_v8 = vsel %vm39_vm0, %v146_v2, 0.0  ;;  %v476_v9 = vadd.f32 -1.0, %v146_v2  ;;  %v787_v58 = vld [vmem:[%s925_s0 + $0x70] sm:$0xff]  ;;  %v797_v5 = vld [vmem:[%s925_s0 + $0x78] sm:$0xff] }
  0x14   :  { %v344_v63 = vadd.f32 %v343_v57, %v342_v54  ;;  %v345_v11 = vsel %vm39_vm0, %v323_v4, 0.0  ;;  %v164_v20 = vmul.f32 %v147_v17, %v147_v17  ;;  %v148_v21 = vmul.f32 %v738_v12, %v738_v12  ;;  %101 = vmatpush.msra.mxu0 %v797_v5  ;;  %485 = vmatpush.msra.mxu1 %v797_v5 }
  0x15   :  { %v324_v15 = vmul.f32 %v476_v9, %v476_v9  ;;  %v185_v16 = vsel %vm39_vm0, %v163_v7, 0.0  ;;  %v236_v23 = vsel %vm39_vm0, %v147_v17, 0.0  ;;  %v477_v24 = vadd.f32 -1.0, %v147_v17  ;;  %486 = vmatpush.msra.mxu2 %v797_v5  ;;  %487 = vmatpush.msra.mxu3 %v797_v5 }
  0x16   :  { %225 = vadd.xlane.f32.xlu1 %v224_v41  ;;  %v346_v14 = vadd.f32 %v345_v11, %v344_v63  ;;  %v186_v18 = vadd.f32 %v185_v16, %v184_v6  ;;  %v187_v26 = vsel %vm39_vm0, %v164_v20, 0.0  ;;  %v165_v27 = vmul.f32 %v148_v21, %v148_v21  ;;  %102 = vmatpush.msra.mxu0 %v787_v58 }
  0x17   :  { %228 = vadd.xlane.f32.xlu2 %v227_v48  ;;  %v347_v19 = vsel %vm39_vm0, %v324_v15, 0.0  ;;  %v239_v28 = vsel %vm39_vm0, %v148_v21, 0.0  ;;  %v478_v29 = vadd.f32 -1.0, %v148_v21  ;;  %v325_v30 = vmul.f32 %v477_v24, %v477_v24  ;;  %v778_v48 = vld [vmem:[%s925_s0 + $0x68] sm:$0xff]  ;;  %488 = vmatpush.msra.mxu1 %v787_v58 }
  0x18   :  { %v348_v22 = vadd.f32 %v347_v19, %v346_v14  ;;  %v188_v32 = vadd.f32 %v187_v26, %v186_v18  ;;  %v149_v33 = vmul.f32 %v751_v25, %v751_v25  ;;  %v189_v37 = vsel %vm39_vm0, %v165_v27, 0.0  ;;  %103 = vmatpush.msra.mxu0 %v778_v48  ;;  %489 = vmatpush.msra.mxu2 %v787_v58 }
  0x19   :  { %v326_v35 = vmul.f32 %v478_v29, %v478_v29  ;;  %v150_v38 = vmul.f32 %v760_v34, %v760_v34  ;;  %v349_v39 = vsel %vm39_vm0, %v325_v30, 0.0  ;;  %v151_v46 = vmul.f32 %v769_v42, %v769_v42  ;;  %491 = vmatpush.msra.mxu1 %v778_v48  ;;  %490 = vmatpush.msra.mxu3 %v787_v58 }
  0x1a   :  { %72 = vxpose.xlu0.b32.cont [4/16] (narrow) %v675_v13, 32  ;;  %v190_v40 = vadd.f32 %v189_v37, %v188_v32  ;;  %v166_v41 = vmul.f32 %v149_v33, %v149_v33  ;;  %v350_v43 = vadd.f32 %v349_v39, %v348_v22  ;;  %v242_v54 = vsel %vm39_vm0, %v149_v33, 0.0  ;;  %104 = vmatpush.msra.mxu0 %v769_v42 }
  0x1b   :  { %v351_v44 = vsel %vm39_vm0, %v326_v35, 0.0  ;;  %v167_v45 = vmul.f32 %v150_v38, %v150_v38  ;;  %v168_v52 = vmul.f32 %v151_v46, %v151_v46  ;;  %v479_v55 = vadd.f32 -1.0, %v149_v33  ;;  %494 = vmatpush.msra.mxu1 %v769_v42  ;;  %492 = vmatpush.msra.mxu2 %v778_v48 }
  0x1c   :  { %v191_v47 = vsel %vm39_vm0, %v166_v41, 0.0  ;;  %v352_v49 = vadd.f32 %v351_v44, %v350_v43  ;;  %v245_v56 = vsel %vm39_vm0, %v150_v38, 0.0  ;;  %v480_v57 = vadd.f32 -1.0, %v150_v38  ;;  %105 = vmatpush.msra.mxu0 %v760_v34  ;;  %493 = vmatpush.msra.mxu3 %v778_v48 }
  0x1d   :  { %v192_v50 = vadd.f32 %v191_v47, %v190_v40  ;;  %v193_v51 = vsel %vm39_vm0, %v167_v45, 0.0  ;;  %v152_v62 = vmul.f32 %v778_v48, %v778_v48  ;;  %v153_v63 = vmul.f32 %v787_v58, %v787_v58  ;;  %497 = vmatpush.msra.mxu1 %v760_v34  ;;  %495 = vmatpush.msra.mxu2 %v769_v42 }
  0x1e   :  { %231 = vadd.xlane.f32.xlu1 %v230_v61  ;;  %v195_v61 = vsel %vm39_vm0, %v168_v52, 0.0  ;;  %v327_v2 = vmul.f32 %v479_v55, %v479_v55  ;;  %v328_v4 = vmul.f32 %v480_v57, %v480_v57  ;;  %v154_v9 = vmul.f32 %v797_v5, %v797_v5  ;;  %106 = vmatpush.msra.mxu0 %v751_v25 }
  0x1f   :  { %234 = vadd.xlane.f32.xlu2 %v233_v8  ;;  %v194_v60 = vadd.f32 %v193_v51, %v192_v50  ;;  %v169_v7 = vmul.f32 %v152_v62, %v152_v62  ;;  %v170_v8 = vmul.f32 %v153_v63, %v153_v63  ;;  %v248_v20 = vsel %vm39_vm0, %v151_v46, 0.0  ;;  %500 = vmatpush.msra.mxu1 %v751_v25 }
  0x20   :  { %v353_v11 = vsel %vm39_vm0, %v327_v2, 0.0  ;;  %v171_v16 = vmul.f32 %v154_v9, %v154_v9  ;;  %v355_v17 = vsel %vm39_vm0, %v328_v4, 0.0  ;;  %v481_v21 = vadd.f32 -1.0, %v151_v46  ;;  %107 = vmatpush.msra.mxu0 %v738_v12  ;;  %498 = vmatpush.msra.mxu2 %v760_v34 }
  0x21   :  { %v196_v6 = vadd.f32 %v195_v61, %v194_v60  ;;  %v354_v14 = vadd.f32 %v353_v11, %v352_v49  ;;  %v197_v15 = vsel %vm39_vm0, %v169_v7, 0.0  ;;  %v199_v19 = vsel %vm39_vm0, %v170_v8, 0.0  ;;  %503 = vmatpush.msra.mxu1 %v738_v12  ;;  %496 = vmatpush.msra.mxu3 %v769_v42 }
  0x22   :  { %73 = vxpose.xlu0.b32.cont [5/16] (narrow) %v692_v31, 32  ;;  %v482_v22 = vadd.f32 -1.0, %v152_v62  ;;  %v251_v26 = vsel %vm39_vm0, %v152_v62, 0.0  ;;  %v621_v38 = vmov 0.0   ;;  %v254_v40 = vsel %vm39_vm0, %v153_v63, 0.0  ;;  %108 = vmatpush.msra.mxu0 %v732_v10 }
  0x23   :  { %v198_v18 = vadd.f32 %v197_v15, %v196_v6  ;;  %v356_v24 = vadd.f32 %v355_v17, %v354_v14  ;;  %47 = vst.msk [vmem:[#allocation4] sm:$0x1] %vm46_vm1, %v621_v38  ;;  %v483_v41 = vadd.f32 -1.0, %v153_v63  ;;  %v484_v43 = vadd.f32 -1.0, %v154_v9  ;;  %506 = vmatpush.msra.mxu1 %v732_v10  ;;  %501 = vmatpush.msra.mxu2 %v751_v25 }
  0x24   :  { %v330_v29 = vmul.f32 %v482_v22, %v482_v22  ;;  %48 = vst.msk [vmem:[#allocation5] sm:$0x1] %vm46_vm1, %v621_v38  ;;  %v257_v45 = vsel %vm39_vm0, %v154_v9, 0.0  ;;  %109 = vmatpush.msra.mxu0 %v722_v59  ;;  %499 = vmatpush.msra.mxu3 %v760_v34 }
  0x25   :  { %v200_v27 = vadd.f32 %v199_v19, %v198_v18  ;;  %40 = vst.msk [vmem:[#allocation2] sm:$0xff] %vm39_vm0, %v621_v38  ;;  %v331_v47 = vmul.f32 %v483_v41, %v483_v41  ;;  %v332_v49 = vmul.f32 %v484_v43, %v484_v43  ;;  %509 = vmatpush.msra.mxu1 %v722_v59 }
  0x26   :  { %237 = vadd.xlane.f32.xlu1 %v236_v23  ;;  %v201_v23 = vsel %vm39_vm0, %v171_v16, 0.0  ;;  %v359_v37 = vsel %vm39_vm0, %v330_v29, 0.0  ;;  %41 = vst.msk [vmem:[#allocation2 + $0x8] sm:$0xff] %vm39_vm0, %v621_v38  ;;  %110 = vmatpush.msra.mxu0 %v713_v53 }
  0x27   :  { %240 = vadd.xlane.f32.xlu2 %v239_v28  ;;  %v329_v28 = vmul.f32 %v481_v21, %v481_v21  ;;  %v202_v30 = vadd.f32 %v201_v23, %v200_v27  ;;  %42 = vst.msk [vmem:[#allocation2 + $0x10] sm:$0xff] %vm39_vm0, %v621_v38  ;;  %v361_v51 = vsel %vm39_vm0, %v331_v47, 0.0  ;;  %v363_v52 = vsel %vm39_vm0, %v332_v49, 0.0  ;;  %504 = vmatpush.msra.mxu2 %v738_v12 }
  0x28   :  { %43 = vst.msk [vmem:[#allocation2 + $0x18] sm:$0xff] %vm39_vm0, %v621_v38  ;;  %512 = vmatpush.msra.mxu1 %v713_v53  ;;  %111 = vmatpush.msra.mxu0 %v699_v36 }
  0x29   :  { %v357_v32 = vsel %vm39_vm0, %v329_v28, 0.0  ;;  %v203_v35 = vrot.slane %v202_v30, 4  ;;  %507 = vmatpush.msra.mxu2 %v732_v10  ;;  %502 = vmatpush.msra.mxu3 %v751_v25  ;;  %45 = vst.msk [vmem:[#allocation3] sm:$0x1] %vm44_vm2, %v621_v38 }
  0x2a   :  { %74 = vxpose.xlu0.b32.cont [6/16] (narrow) %v699_v36, 32  ;;  %v358_v33 = vadd.f32 %v357_v32, %v356_v24  ;;  %515 = vmatpush.msra.mxu1 %v699_v36 }
  0x2b   :  { %v204_v39 = vadd.f32 %v203_v35, %v202_v30  ;;  %112 = vmatpush.msra.mxu0 %v692_v31  ;;  %510 = vmatpush.msra.mxu2 %v722_v59 }
  0x2c   :  { %v360_v44 = vadd.f32 %v359_v37, %v358_v33  ;;  %518 = vmatpush.msra.mxu1 %v692_v31  ;;  %505 = vmatpush.msra.mxu3 %v738_v12 }
  0x2d   :  { %v205_v46 = vrot.slane %v204_v39, 2  ;;  %113 = vmatpush.msra.mxu0 %v675_v13  ;;  %513 = vmatpush.msra.mxu2 %v713_v53 }
  0x2e   :  { %243 = vadd.xlane.f32.xlu1 %v242_v54  ;;  %v362_v54 = vadd.f32 %v361_v51, %v360_v44  ;;  %521 = vmatpush.msra.mxu1 %v675_v13 }
  0x2f   :  { %246 = vadd.xlane.f32.xlu2 %v245_v56  ;;  %v206_v50 = vadd.f32 %v205_v46, %v204_v39  ;;  %v155_v56 = vld [vmem:[#allocation4] sm:$0x1]  ;;  %114 = vmatpush.msra.mxu0 %v663_v3 }
  0x30   :  { %v364_v57 = vadd.f32 %v363_v52, %v362_v54  ;;  %516 = vmatpush.msra.mxu2 %v699_v36  ;;  %524 = vmatpush.msra.mxu1 %v663_v3 }
  0x31   :  { %v207_v55 = vrot.slane %v206_v50, 1  ;;  %508 = vmatpush.msra.mxu3 %v732_v10  ;;  %115 = vmatpush.msra.mxu0 %v656_v1 }
  0x32   :  { %75 = vxpose.xlu0.b32.cont [7/16] (narrow) %v713_v53, 32  ;;  %v365_v61 = vrot.slane %v364_v57, 4  ;;  %519 = vmatpush.msra.mxu2 %v692_v31 }
  0x33   :  { %v208_v60 = vadd.f32 %v207_v55, %v206_v50  ;;  %527 = vmatpush.msra.mxu1 %v656_v1  ;;  %116 = vmatpush.msra.mxu0 %v650_v0 }
  0x34   :  { %v366_v63 = vadd.f32 %v365_v61, %v364_v57  ;;  %511 = vmatpush.msra.mxu3 %v722_v59  ;;  %522 = vmatpush.msra.mxu2 %v675_v13 }
  0x35   :  { %v209_v62 = vadd.f32 %v208_v60, %v155_v56  ;;  %530 = vmatpush.msra.mxu1 %v650_v0 }
  0x36   :  { %249 = vadd.xlane.f32.xlu1 %v248_v20  ;;  %v367_v2 = vrot.slane %v366_v63, 2  ;;  %514 = vmatpush.msra.mxu3 %v713_v53 }
  0x37   :  { %252 = vadd.xlane.f32.xlu2 %v251_v26  ;;  %211 = vst.msk [vmem:[#allocation4] sm:$0x1] %vm46_vm1, %v209_v62  ;;  %525 = vmatpush.msra.mxu2 %v663_v3 }
  0x38   :  { %v368_v4 = vadd.f32 %v367_v2, %v366_v63  ;;  %517 = vmatpush.msra.mxu3 %v699_v36 }
  0x39   :  { %528 = vmatpush.msra.mxu2 %v656_v1 }
  0x3a   :  { %76 = vxpose.xlu0.b32.cont [8/16] (narrow) %v722_v59, 32  ;;  %v369_v6 = vrot.slane %v368_v4, 1  ;;  %520 = vmatpush.msra.mxu3 %v692_v31 }
  0x3b   :  { %531 = vmatpush.msra.mxu2 %v650_v0 }
  0x3c   :  { %523 = vmatpush.msra.mxu3 %v675_v13 }
  0x3e   :  { %255 = vadd.xlane.f32.xlu1 %v254_v40  ;;  %v387_v7 = vld [vmem:[#allocation4] sm:$0x1]  ;;  %526 = vmatpush.msra.mxu3 %v663_v3 }
  0x3f   :  { %258 = vadd.xlane.f32.xlu2 %v257_v45  ;;  %v388_v8 = vsel %vm46_vm1, %v387_v7, 0.0 }
  0x40   :  { %529 = vmatpush.msra.mxu3 %v656_v1 }
  0x42   :  { %77 = vxpose.xlu0.b32.cont [9/16] (narrow) %v732_v10, 32  ;;  %v370_v10 = vadd.f32 %v369_v6, %v368_v4  ;;  %532 = vmatpush.msra.mxu3 %v650_v0  ;;  %v260_v6 = vld [vmem:[#allocation3] sm:$0x1] }
  0x46   :  { %389 = vadd.xlane.f32.xlu1 %v388_v8 }
  0x4a   :  { %78 = vxpose.xlu0.b32.cont [10/16] (narrow) %v738_v12, 32  ;;  %v333_v12 = vld [vmem:[#allocation5] sm:$0x1] }
  0x52   :  { %79 = vxpose.xlu0.b32.cont [11/16] (narrow) %v751_v25, 32  ;;  %v371_v25 = vadd.f32 %v370_v10, %v333_v12 }
  0x54   :  { %372 = vst.msk [vmem:[#allocation5] sm:$0x1] %vm46_vm1, %v371_v25 }
  0x5a   :  { %80 = vxpose.xlu0.b32.cont [12/16] (narrow) %v760_v34, 32 }
  0x5b   :  { %v401_v53 = vld [vmem:[#allocation5] sm:$0x1] }
  0x5c   :  { %v402_v59 = vsel %vm46_vm1, %v401_v53, 0.0 }
  0x5d   :  { %403 = vadd.xlane.f32.xlu2 %v402_v59 }
  0x62   :  { %81 = vxpose.xlu0.b32.cont [13/16] (narrow) %v769_v42, 32 }
  0x6a   :  { %82 = vxpose.xlu0.b32.cont [14/16] (narrow) %v778_v48, 32 }
  0x72   :  { %83 = vxpose.xlu0.b32.cont [15/16] (narrow) %v787_v58, 32 }
  0x79   :  { %v214_v31 = vpop.xlane.xlu1 %213 }
  0x7a   :  { %84 = vxpose.xlu0.b32.end [16/16] (narrow) %v797_v5, 32  ;;  %v220_v13 = vpop.xlane.xlu2 %219  ;;  %v261_v36 = vmul.f32 %v214_v31, %v214_v31 }
  0x7b   :  { %v263_v34 = vmul.f32 %v220_v13, %v220_v13 }
  0x81   :  { %v217_v3 = vpop.xlane.xlu1 %216 }
  0x82   :  { %v262_v1 = vmul.f32 %v217_v3, %v217_v3  ;;  %v223_v9 = vpop.xlane.xlu2 %222 }
  0x83   :  { %v264_v14 = vmul.f32 %v223_v9, %v223_v9 }
  0x84   :  { %v277_v11 = vadd.f32 %v262_v1, %v261_v36 }
  0x86   :  { %v278_v15 = vadd.f32 %v277_v11, %v263_v34 }
  0x88   :  { %v279_v0 = vadd.f32 %v278_v15, %v264_v14 }
  0x89   :  { %v226_v16 = vpop.xlane.xlu1 %225 }
  0x8a   :  { %v265_v42 = vmul.f32 %v226_v16, %v226_v16  ;;  %v229_v17 = vpop.xlane.xlu2 %228  ;;  %v65_v16 = vld [vmem:[#allocation2] sm:$0xff] }
  0x8b   :  { %v266_v48 = vmul.f32 %v229_v17, %v229_v17 }
  0x8c   :  { %v280_v18 = vadd.f32 %v279_v0, %v265_v42 }
  0x8e   :  { %v281_v19 = vadd.f32 %v280_v18, %v266_v48  ;;  %v66_v48 = vld [vmem:[#allocation2 + $0x8] sm:$0xff] }
  0x91   :  { %v232_v58 = vpop.xlane.xlu1 %231 }
  0x92   :  { %v267_v20 = vmul.f32 %v232_v58, %v232_v58  ;;  %v235_v21 = vpop.xlane.xlu2 %234 }
  0x93   :  { %v268_v22 = vmul.f32 %v235_v21, %v235_v21  ;;  %v67_v21 = vld [vmem:[#allocation2 + $0x10] sm:$0xff] }
  0x94   :  { %v282_v5 = vadd.f32 %v281_v19, %v267_v20 }
  0x96   :  { %v283_v23 = vadd.f32 %v282_v5, %v268_v22 }
  0x99   :  { %v238_v24 = vpop.xlane.xlu1 %237 }
  0x9a   :  { %v269_v26 = vmul.f32 %v238_v24, %v238_v24  ;;  %v241_v28 = vpop.xlane.xlu2 %240  ;;  %v68_v24 = vld [vmem:[#allocation2 + $0x18] sm:$0xff] }
  0x9b   :  { %v270_v29 = vmul.f32 %v241_v28, %v241_v28 }
  0x9c   :  { %v284_v27 = vadd.f32 %v283_v23, %v269_v26 }
  0x9e   :  { %v285_v30 = vadd.f32 %v284_v27, %v270_v29 }
  0xa1   :  { %v244_v33 = vpop.xlane.xlu1 %243 }
  0xa2   :  { %v271_v35 = vmul.f32 %v244_v33, %v244_v33  ;;  %v247_v39 = vpop.xlane.xlu2 %246 }
  0xa3   :  { %v272_v40 = vmul.f32 %v247_v39, %v247_v39 }
  0xa4   :  { %v286_v37 = vadd.f32 %v285_v30, %v271_v35 }
  0xa6   :  { %v85_v32 = vpop.trf.xlu0  ;;  %v287_v41 = vadd.f32 %v286_v37, %v272_v40 }
  0xa7   :  { %117 = vmatmul.f32.vlgmr.msra.gmra.mxu0 %v85_v32 }
  0xa9   :  { %v250_v44 = vpop.xlane.xlu1 %249 }
  0xaa   :  { %v273_v45 = vmul.f32 %v250_v44, %v250_v44  ;;  %v253_v47 = vpop.xlane.xlu2 %252 }
  0xab   :  { %v274_v49 = vmul.f32 %v253_v47, %v253_v47 }
  0xac   :  { %v288_v46 = vadd.f32 %v287_v41, %v273_v45 }
  0xae   :  { %v86_v43 = vpop.trf.xlu0  ;;  %v289_v38 = vadd.f32 %v288_v46, %v274_v49 }
  0xaf   :  { %120 = vmatmul.f32.vlgmr.msra.gmra.mxu1 %v86_v43 }
  0xb1   :  { %v256_v51 = vpop.xlane.xlu1 %255 }
  0xb2   :  { %v275_v52 = vmul.f32 %v256_v51, %v256_v51  ;;  %v259_v55 = vpop.xlane.xlu2 %258 }
  0xb3   :  { %v276_v56 = vmul.f32 %v259_v55, %v259_v55 }
  0xb4   :  { %v290_v54 = vadd.f32 %v289_v38, %v275_v52 }
  0xb6   :  { %v87_v50 = vpop.trf.xlu0  ;;  %v291_v57 = vadd.f32 %v290_v54, %v276_v56 }
  0xb7   :  { %123 = vmatmul.f32.vlgmr.msra.gmra.mxu2 %v87_v50 }
  0xb8   :  { %v292_v61 = vrot.slane %v291_v57, 4 }
  0xb9   :  { %v390_v7 = vpop.xlane.xlu1 %389 }
  0xba   :  { %v293_v62 = vadd.f32 %v292_v61, %v291_v57  ;;  %v391_v8 = vrot.slane %v390_v7, 4 }
  0xbc   :  { %v294_v63 = vrot.slane %v293_v62, 2  ;;  %v392_v25 = vadd.f32 %v391_v8, %v390_v7 }
  0xbe   :  { %v88_v60 = vpop.trf.xlu0  ;;  %v295_v2 = vadd.f32 %v294_v63, %v293_v62  ;;  %v393_v53 = vrot.slane %v392_v25, 2 }
  0xbf   :  { %126 = vmatmul.f32.vlgmr.msra.gmra.mxu3 %v88_v60 }
  0xc0   :  { %v296_v4 = vrot.slane %v295_v2, 1  ;;  %v394_v59 = vadd.f32 %v393_v53, %v392_v25 }
  0xc2   :  { %v297_v12 = vadd.f32 %v296_v4, %v295_v2  ;;  %v395_v31 = vrot.slane %v394_v59, 1 }
  0xc4   :  { %v298_v10 = vadd.f32 %v297_v12, %v260_v6  ;;  %v396_v36 = vadd.f32 %v395_v31, %v394_v59 }
  0xc6   :  { %300 = vst.msk [vmem:[#allocation3] sm:$0x1] %vm44_vm2, %v298_v10 }
  0xcd   :  { %v384_v13 = vld [vmem:[#allocation3] sm:$0x1] }
  0xce   :  { %533 = vpush %v384_v13 }
  0xcf   :  { %535 = vpush %v396_v36 }
  0xd0   :  { %v404_v3 = vpop.xlane.xlu2 %403 }
  0xd1   :  { %v405_v34 = vrot.slane %v404_v3, 4 }
  0xd3   :  { %v406_v1 = vadd.f32 %v405_v34, %v404_v3 }
  0xd5   :  { %v407_v9 = vrot.slane %v406_v1, 2 }
  0xd7   :  { %v408_v11 = vadd.f32 %v407_v9, %v406_v1 }
  0xd9   :  { %v409_v14 = vrot.slane %v408_v11, 1 }
  0xdb   :  { %v410_v15 = vadd.f32 %v409_v14, %v408_v11 }
  0xdd   :  { %537 = vpush %v410_v15 }
  0xff   :  { %s534_s0 = spop %533 }
 0x100   :  { %s536_s22 = spop %535 }
 0x101   :  { %s398_s23 = ssub.f32 %s534_s0, %s536_s22 }
 0x103   :  { %v399_v0 = vstv %s398_s23 }
 0x104   :  { %400 = vst.msk [vmem:[#allocation8] sm:$0x1] %vm44_vm2, %v399_v0 }
 0x105   :  { %437 = dma.vmem_to_hbm [thread:$0]  %s433_s18, 16, %s435_s21, [#allocation9]  }
 0x10e   :  { %s538_s29 = spop %537 }
 0x10f   :  { %v412_v18 = vstv %s538_s29 }
 0x110   :  { %413 = vst.msk [vmem:[#allocation10] sm:$0x1] %vm44_vm2, %v412_v18 }
 0x111   :  { %448 = dma.vmem_to_hbm [thread:$0]  %s444_s25, 16, %s446_s28, [#allocation9]  }
 0x124   :  { %v118_v42 = vpop.f32.mrf.mxu0 }
 0x125   :  { %v130_v17 = vadd.f32 %v118_v42, %v65_v16 }
 0x127   :  { %135 = vst.msk [vmem:[#allocation2] sm:$0xff] %vm39_vm0, %v130_v17 }
 0x12c   :  { %v121_v19 = vpop.f32.mrf.mxu1 }
 0x12d   :  { %v131_v58 = vadd.f32 %v121_v19, %v66_v48 }
 0x12e   :  { %v376_v20 = vld [vmem:[#allocation2] sm:$0xff] }
 0x12f   :  { %136 = vst.msk [vmem:[#allocation2 + $0x8] sm:$0xff] %vm39_vm0, %v131_v58 }
 0x130   :  { %380 = vst.msk [vmem:[#allocation6] sm:$0xff] %vm39_vm0, %v376_v20 }
 0x136   :  { %v377_v5 = vld [vmem:[#allocation2 + $0x8] sm:$0xff] }
 0x137   :  { %381 = vst.msk [vmem:[#allocation6 + $0x8] sm:$0xff] %vm39_vm0, %v377_v5 }
 0x13a   :  { %v124_v22 = vpop.f32.mrf.mxu2 }
 0x13b   :  { %v132_v23 = vadd.f32 %v124_v22, %v67_v21 }
 0x13d   :  { %137 = vst.msk [vmem:[#allocation2 + $0x10] sm:$0xff] %vm39_vm0, %v132_v23 }
 0x142   :  { %v127_v26 = vpop.f32.mrf.mxu3 }
 0x143   :  { %v133_v27 = vadd.f32 %v127_v26, %v68_v24 }
 0x144   :  { %v378_v28 = vld [vmem:[#allocation2 + $0x10] sm:$0xff] }
 0x145   :  { %138 = vst.msk [vmem:[#allocation2 + $0x18] sm:$0xff] %vm39_vm0, %v133_v27 }
 0x146   :  { %382 = vst.msk [vmem:[#allocation6 + $0x10] sm:$0xff] %vm39_vm0, %v378_v28 }
 0x14c   :  { %v379_v29 = vld [vmem:[#allocation2 + $0x18] sm:$0xff] }
 0x14d   :  { %383 = vst.msk [vmem:[#allocation6 + $0x18] sm:$0xff] %vm39_vm0, %v379_v29 }
 0x14e   :  { %426 = dma.vmem_to_hbm [thread:$0]  %s419_s3, 512, %s421_s5, [#allocation7], %s625_s6, %s625_s6, %s626_s7  }
 0x14f   :  { %617 = dma.done.wait [#allocation7], 512  }
 0x150   :  { %618 = vsyncadd [#allocation7], 4294966784 }
 0x151   :  { %619 = dma.done.wait [#allocation9], 32  }
 0x152   :  { %620 = vsyncadd [#allocation9], 4294967264 }
 0x153   :  { %461 = vsyncpa [#allocation7], 1 }
 0x154   :  { %462 = vsyncpa [#allocation9], 1 }

</bundles_post_ra>
